<compile_context>
chip_gen: v7x
topology: tpu7x:2x2x1
jax: 0.10.0
libtpu: 0.0.40
codegen_flags: <defaults>
</compile_context>

<pallas_src>
import math

import jax
import jax.numpy as jnp
import numpy as np
from jax import lax
from jax.experimental import pallas as pl
from jax.experimental.pallas import tpu as pltpu


def _round_up(v, m):
    return -(-v // m) * m


def _pick_bf_tile(BF, N, Cin, M, Cout, itemsize=4, budget_bytes=12 << 20):
    """Number of (b, f) slabs per grid step, sized from a VMEM budget.

    Accounts for double-buffering of the x, D and out blocks and for the
    (8, 128) sublane/lane padding of each (channels, N) tile.
    """
    lanes = _round_up(N, 128)
    sublanes = _round_up(Cin, 8) + _round_up(M, 8) + _round_up(Cout, 8)
    per_bf = 2 * itemsize * lanes * sublanes  # x2 for double buffering
    return int(max(1, min(BF, budget_bytes // per_bf)))


def _make_kernel(bf_tile):
    def kernel(x_ref, d_ref, coef_ref, bias_ref, out_ref):
        # Small constants, loaded once (resident across the loop).
        c = coef_ref[...]       # (Cout, M, Cin), pre-scaled by 1/sqrt(m_samples)
        bias = bias_ref[...]    # (Cout, 1)

        def body(b, carry):
            xb = x_ref[b]       # (Cin, N)   - N on lanes
            db = d_ref[b]       # (M, N)     - N on lanes

            # Dt_x[m, i] = sum_n db[m, n] * xb[i, n]
            # Contract the shared lane axis directly (QK^T-style), no transpose.
            dt_x = lax.dot_general(
                db, xb, (((1,), (1,)), ((), ())),
                preferred_element_type=jnp.float32)              # (M, Cin)

            # W[o, m] = sum_i c[o, m, i] * Dt_x[m, i]   (tiny: Cout*M*Cin MACs)
            w = jnp.sum(c * dt_x[None, :, :], axis=2)            # (Cout, M)

            # out_T[o, n] = sum_m W[o, m] * db[m, n] + bias[o]   (plain NN matmul)
            out_t = lax.dot_general(
                w, db, (((1,), (0,)), ((), ())),
                preferred_element_type=jnp.float32)              # (Cout, N)

            out_ref[b] = (out_t + bias).astype(out_ref.dtype)
            return carry

        lax.fori_loop(0, bf_tile, body, 0, unroll=min(bf_tile, 8))

    return kernel


def random_eigenframe_filter(x, D, coefficients, bias, m_samples, *,
                             bf_tile=None,
                             vmem_limit_bytes=32 * 1024 * 1024):
    """x: (B,F,N,Cin), D: (B,F,N,M), coefficients: (1,1,Cout,Cin,M),
    bias: (1,1,1,Cout).  Returns (B,F,N,Cout)."""
    B, F, N, Cin = x.shape
    M = D.shape[-1]
    Cout = coefficients.shape[2]
    BF = B * F
    scale = 1.0 / math.sqrt(m_samples)

    # --- lane-dense layout: put N on the lane (last) axis -------------------
    x_t = jnp.transpose(x, (0, 1, 3, 2)).reshape(BF, Cin, N).astype(jnp.float32)
    d_t = jnp.transpose(D, (0, 1, 3, 2)).reshape(BF, M, N).astype(jnp.float32)

    # coefficients (1,1,Cout,Cin,M) -> (Cout, M, Cin), scale folded in once.
    coef = (jnp.transpose(coefficients.reshape(Cout, Cin, M), (0, 2, 1))
            * scale).astype(jnp.float32)
    bias2d = bias.reshape(Cout, 1).astype(jnp.float32)

    # --- tiling over the collapsed (B*F) axis -------------------------------
    if bf_tile is None:
        bf_tile = _pick_bf_tile(BF, N, Cin, M, Cout)
    bf_tile = int(max(1, min(bf_tile, BF)))
    n_steps = -(-BF // bf_tile)
    BF_pad = n_steps * bf_tile
    if BF_pad != BF:
        pad = BF_pad - BF
        x_t = jnp.pad(x_t, ((0, pad), (0, 0), (0, 0)))
        d_t = jnp.pad(d_t, ((0, pad), (0, 0), (0, 0)))

    kernel = _make_kernel(bf_tile)

    out_t = pl.pallas_call(
        kernel,
        out_shape=jax.ShapeDtypeStruct((BF_pad, Cout, N), jnp.float32),
        grid=(n_steps,),
        in_specs=[
            pl.BlockSpec((bf_tile, Cin, N), lambda g: (g, 0, 0)),
            pl.BlockSpec((bf_tile, M, N), lambda g: (g, 0, 0)),
            pl.BlockSpec((Cout, M, Cin), lambda g: (0, 0, 0)),
            pl.BlockSpec((Cout, 1), lambda g: (0, 0)),
        ],
        out_specs=pl.BlockSpec((bf_tile, Cout, N), lambda g: (g, 0, 0)),
        compiler_params=pltpu.CompilerParams(
            dimension_semantics=("parallel",),
            vmem_limit_bytes=vmem_limit_bytes,
        ),
    )(x_t, d_t, coef, bias2d)

    out_t = out_t[:BF].reshape(B, F, Cout, N)
    return jnp.transpose(out_t, (0, 1, 3, 2))  # (B, F, N, Cout)


def reference_forward_np(x, D, coefficients, bias, m_samples):
    """float64 numpy replica of the PyTorch einsum chain (algebraically
    identical: W[o,m] = sum_i C[o,i,m] Dt_x[m,i]; out = scale*D@W^T + bias)."""
    x64 = np.asarray(x, np.float64)
    D64 = np.asarray(D, np.float64)
    C64 = np.asarray(coefficients, np.float64)[0, 0]   # (Cout, Cin, M)
    b64 = np.asarray(bias, np.float64)                  # (1,1,1,Cout)
    scale = 1.0 / np.sqrt(m_samples)
    Dt_x = np.einsum('bfnm,bfni->bfmi', D64, x64)       # (B,F,M,Cin)
    W = np.einsum('oim,bfmi->bfom', C64, Dt_x)          # (B,F,Cout,M)
    y = scale * np.einsum('bfnm,bfom->bfno', D64, W)    # (B,F,N,Cout)
    return y + b64


if __name__ == "__main__":
    # Small, module-consistent shapes (N = nodes kept at one full lane width).
    B, F, N = 2, 3, 128
    in_channels, out_channels = 8, 8
    k_bands, m_samples = 2, 4
    M = k_bands * m_samples

    key = jax.random.PRNGKey(0)
    kx, kd, kc, kb = jax.random.split(key, 4)

    x = jax.random.normal(kx, (B, F, N, in_channels), dtype=jnp.float32)
    D = jax.random.normal(kd, (B, F, N, M), dtype=jnp.float32)
    coefficients = jax.random.normal(
        kc, (1, 1, out_channels, in_channels, M), dtype=jnp.float32)
    bias = jax.random.normal(kb, (1, 1, 1, out_channels), dtype=jnp.float32)

    out = random_eigenframe_filter(x, D, coefficients, bias, m_samples)
    out = jax.block_until_ready(out)

    ref = reference_forward_np(x, D, coefficients, bias, m_samples)
    np.testing.assert_allclose(np.asarray(out), ref.astype(np.float32),
                               rtol=1e-4, atol=1e-3)

    print("KERNEL_OK")
</pallas_src>

<mosaic_0001>
module attributes {stable_mosaic.version = 11 : i64} {
  func.func @kernel(%arg0: i32, %arg1: memref<6x8x128xf32, #tpu.memory_space<vmem>>, %arg2: memref<6x8x128xf32, #tpu.memory_space<vmem>>, %arg3: memref<8x8x8xf32, #tpu.memory_space<vmem>>, %arg4: memref<8x1xf32, #tpu.memory_space<vmem>>, %arg5: memref<6x8x128xf32, #tpu.memory_space<vmem>>) attributes {dimension_semantics = [#tpu.dimension_semantics<parallel>], iteration_bounds = array<i64: 1>, scalar_prefetch = 0 : i64, scratch_operands = 0 : i64, tpu.core_type = #tpu.core_type<tc>, window_params = [{transform_indices = @transform_0, window_bounds = array<i64: 6, 8, 128>}, {transform_indices = @transform_1, window_bounds = array<i64: 6, 8, 128>}, {pipeline_mode = #tpu.pipeline_mode<synchronous>, transform_indices = @transform_2, window_bounds = array<i64: 8, 8, 8>}, {pipeline_mode = #tpu.pipeline_mode<synchronous>, transform_indices = @transform_3, window_bounds = array<i64: 8, 1>}, {transform_indices = @transform_4, window_bounds = array<i64: 6, 8, 128>}]} {
    %c0 = arith.constant 0 : index
    %c0_0 = arith.constant 0 : index
    %c0_1 = arith.constant 0 : index
    %0 = vector.load %arg3[%c0, %c0_0, %c0_1] : memref<8x8x8xf32, #tpu.memory_space<vmem>>, vector<8x8x8xf32>
    %c0_2 = arith.constant 0 : index
    %c0_3 = arith.constant 0 : index
    %1 = vector.load %arg4[%c0_2, %c0_3] : memref<8x1xf32, #tpu.memory_space<vmem>>, vector<8x1xf32>
    %c0_i32 = arith.constant 0 : i32
    %2 = arith.index_cast %c0_i32 : i32 to index
    %c0_4 = arith.constant 0 : index
    %c0_5 = arith.constant 0 : index
    %3 = vector.load %arg1[%2, %c0_4, %c0_5] : memref<6x8x128xf32, #tpu.memory_space<vmem>>, vector<1x8x128xf32>
    %4 = vector.shape_cast %3 : vector<1x8x128xf32> to vector<8x128xf32>
    %5 = arith.index_cast %c0_i32 : i32 to index
    %c0_6 = arith.constant 0 : index
    %c0_7 = arith.constant 0 : index
    %6 = vector.load %arg2[%5, %c0_6, %c0_7] : memref<6x8x128xf32, #tpu.memory_space<vmem>>, vector<1x8x128xf32>
    %7 = vector.shape_cast %6 : vector<1x8x128xf32> to vector<8x128xf32>
    %cst = arith.constant dense<0.000000e+00> : vector<8x8xf32>
    %8 = tpu.matmul %7, %4, %cst {dimension_numbers = #tpu.dot_dimension_numbers<[1], [1], [0], [0], [0, 0, 1, 0], [], []>} : vector<8x128xf32>, vector<8x128xf32>, vector<8x8xf32> -> vector<8x8xf32>
    %9 = vector.shape_cast %8 : vector<8x8xf32> to vector<1x8x8xf32>
    %10 = vector.broadcast %9 : vector<1x8x8xf32> to vector<8x8x8xf32>
    %11 = arith.mulf %0, %10 : vector<8x8x8xf32>
    %cst_8 = arith.constant dense<0.000000e+00> : vector<8x8xf32>
    %12 = vector.multi_reduction <add>, %11, %cst_8 [2] : vector<8x8x8xf32> to vector<8x8xf32>
    %cst_9 = arith.constant dense<0.000000e+00> : vector<8x128xf32>
    %13 = tpu.matmul %12, %7, %cst_9 {dimension_numbers = #tpu.dot_dimension_numbers<[1], [0], [0], [1], [0, 0, 1, 1], [], []>} : vector<8x8xf32>, vector<8x128xf32>, vector<8x128xf32> -> vector<8x128xf32>
    %14 = vector.broadcast %1 : vector<8x1xf32> to vector<8x128xf32>
    %15 = arith.addf %13, %14 : vector<8x128xf32>
    %16 = arith.index_cast %c0_i32 : i32 to index
    %c0_10 = arith.constant 0 : index
    %c0_11 = arith.constant 0 : index
    %17 = vector.load %arg5[%16, %c0_10, %c0_11] : memref<6x8x128xf32, #tpu.memory_space<vmem>>, vector<1x8x128xf32>
    %18 = vector.shape_cast %17 : vector<1x8x128xf32> to vector<8x128xf32>
    %19 = vector.shape_cast %15 : vector<8x128xf32> to vector<1x8x128xf32>
    tpu.vector_store %arg5[%16, %c0_10, %c0_11], %19 {strides = array<i32>} : memref<6x8x128xf32, #tpu.memory_space<vmem>>, vector<1x8x128xf32>,
    %c1_i32 = arith.constant 1 : i32
    %20 = arith.index_cast %c1_i32 : i32 to index
    %c0_12 = arith.constant 0 : index
    %c0_13 = arith.constant 0 : index
    %21 = vector.load %arg1[%20, %c0_12, %c0_13] : memref<6x8x128xf32, #tpu.memory_space<vmem>>, vector<1x8x128xf32>
    %22 = vector.shape_cast %21 : vector<1x8x128xf32> to vector<8x128xf32>
    %23 = arith.index_cast %c1_i32 : i32 to index
    %c0_14 = arith.constant 0 : index
    %c0_15 = arith.constant 0 : index
    %24 = vector.load %arg2[%23, %c0_14, %c0_15] : memref<6x8x128xf32, #tpu.memory_space<vmem>>, vector<1x8x128xf32>
    %25 = vector.shape_cast %24 : vector<1x8x128xf32> to vector<8x128xf32>
    %cst_16 = arith.constant dense<0.000000e+00> : vector<8x8xf32>
    %26 = tpu.matmul %25, %22, %cst_16 {dimension_numbers = #tpu.dot_dimension_numbers<[1], [1], [0], [0], [0, 0, 1, 0], [], []>} : vector<8x128xf32>, vector<8x128xf32>, vector<8x8xf32> -> vector<8x8xf32>
    %27 = vector.shape_cast %26 : vector<8x8xf32> to vector<1x8x8xf32>
    %28 = vector.broadcast %27 : vector<1x8x8xf32> to vector<8x8x8xf32>
    %29 = arith.mulf %0, %28 : vector<8x8x8xf32>
    %cst_17 = arith.constant dense<0.000000e+00> : vector<8x8xf32>
    %30 = vector.multi_reduction <add>, %29, %cst_17 [2] : vector<8x8x8xf32> to vector<8x8xf32>
    %cst_18 = arith.constant dense<0.000000e+00> : vector<8x128xf32>
    %31 = tpu.matmul %30, %25, %cst_18 {dimension_numbers = #tpu.dot_dimension_numbers<[1], [0], [0], [1], [0, 0, 1, 1], [], []>} : vector<8x8xf32>, vector<8x128xf32>, vector<8x128xf32> -> vector<8x128xf32>
    %32 = vector.broadcast %1 : vector<8x1xf32> to vector<8x128xf32>
    %33 = arith.addf %31, %32 : vector<8x128xf32>
    %34 = arith.index_cast %c1_i32 : i32 to index
    %c0_19 = arith.constant 0 : index
    %c0_20 = arith.constant 0 : index
    %35 = vector.load %arg5[%34, %c0_19, %c0_20] : memref<6x8x128xf32, #tpu.memory_space<vmem>>, vector<1x8x128xf32>
    %36 = vector.shape_cast %35 : vector<1x8x128xf32> to vector<8x128xf32>
    %37 = vector.shape_cast %33 : vector<8x128xf32> to vector<1x8x128xf32>
    tpu.vector_store %arg5[%34, %c0_19, %c0_20], %37 {strides = array<i32>} : memref<6x8x128xf32, #tpu.memory_space<vmem>>, vector<1x8x128xf32>,
    %c2_i32 = arith.constant 2 : i32
    %38 = arith.index_cast %c2_i32 : i32 to index
    %c0_21 = arith.constant 0 : index
    %c0_22 = arith.constant 0 : index
    %39 = vector.load %arg1[%38, %c0_21, %c0_22] : memref<6x8x128xf32, #tpu.memory_space<vmem>>, vector<1x8x128xf32>
    %40 = vector.shape_cast %39 : vector<1x8x128xf32> to vector<8x128xf32>
    %41 = arith.index_cast %c2_i32 : i32 to index
    %c0_23 = arith.constant 0 : index
    %c0_24 = arith.constant 0 : index
    %42 = vector.load %arg2[%41, %c0_23, %c0_24] : memref<6x8x128xf32, #tpu.memory_space<vmem>>, vector<1x8x128xf32>
    %43 = vector.shape_cast %42 : vector<1x8x128xf32> to vector<8x128xf32>
    %cst_25 = arith.constant dense<0.000000e+00> : vector<8x8xf32>
    %44 = tpu.matmul %43, %40, %cst_25 {dimension_numbers = #tpu.dot_dimension_numbers<[1], [1], [0], [0], [0, 0, 1, 0], [], []>} : vector<8x128xf32>, vector<8x128xf32>, vector<8x8xf32> -> vector<8x8xf32>
    %45 = vector.shape_cast %44 : vector<8x8xf32> to vector<1x8x8xf32>
    %46 = vector.broadcast %45 : vector<1x8x8xf32> to vector<8x8x8xf32>
    %47 = arith.mulf %0, %46 : vector<8x8x8xf32>
    %cst_26 = arith.constant dense<0.000000e+00> : vector<8x8xf32>
    %48 = vector.multi_reduction <add>, %47, %cst_26 [2] : vector<8x8x8xf32> to vector<8x8xf32>
    %cst_27 = arith.constant dense<0.000000e+00> : vector<8x128xf32>
    %49 = tpu.matmul %48, %43, %cst_27 {dimension_numbers = #tpu.dot_dimension_numbers<[1], [0], [0], [1], [0, 0, 1, 1], [], []>} : vector<8x8xf32>, vector<8x128xf32>, vector<8x128xf32> -> vector<8x128xf32>
    %50 = vector.broadcast %1 : vector<8x1xf32> to vector<8x128xf32>
    %51 = arith.addf %49, %50 : vector<8x128xf32>
    %52 = arith.index_cast %c2_i32 : i32 to index
    %c0_28 = arith.constant 0 : index
    %c0_29 = arith.constant 0 : index
    %53 = vector.load %arg5[%52, %c0_28, %c0_29] : memref<6x8x128xf32, #tpu.memory_space<vmem>>, vector<1x8x128xf32>
    %54 = vector.shape_cast %53 : vector<1x8x128xf32> to vector<8x128xf32>
    %55 = vector.shape_cast %51 : vector<8x128xf32> to vector<1x8x128xf32>
    tpu.vector_store %arg5[%52, %c0_28, %c0_29], %55 {strides = array<i32>} : memref<6x8x128xf32, #tpu.memory_space<vmem>>, vector<1x8x128xf32>,
    %c3_i32 = arith.constant 3 : i32
    %56 = arith.index_cast %c3_i32 : i32 to index
    %c0_30 = arith.constant 0 : index
    %c0_31 = arith.constant 0 : index
    %57 = vector.load %arg1[%56, %c0_30, %c0_31] : memref<6x8x128xf32, #tpu.memory_space<vmem>>, vector<1x8x128xf32>
    %58 = vector.shape_cast %57 : vector<1x8x128xf32> to vector<8x128xf32>
    %59 = arith.index_cast %c3_i32 : i32 to index
    %c0_32 = arith.constant 0 : index
    %c0_33 = arith.constant 0 : index
    %60 = vector.load %arg2[%59, %c0_32, %c0_33] : memref<6x8x128xf32, #tpu.memory_space<vmem>>, vector<1x8x128xf32>
    %61 = vector.shape_cast %60 : vector<1x8x128xf32> to vector<8x128xf32>
    %cst_34 = arith.constant dense<0.000000e+00> : vector<8x8xf32>
    %62 = tpu.matmul %61, %58, %cst_34 {dimension_numbers = #tpu.dot_dimension_numbers<[1], [1], [0], [0], [0, 0, 1, 0], [], []>} : vector<8x128xf32>, vector<8x128xf32>, vector<8x8xf32> -> vector<8x8xf32>
    %63 = vector.shape_cast %62 : vector<8x8xf32> to vector<1x8x8xf32>
    %64 = vector.broadcast %63 : vector<1x8x8xf32> to vector<8x8x8xf32>
    %65 = arith.mulf %0, %64 : vector<8x8x8xf32>
    %cst_35 = arith.constant dense<0.000000e+00> : vector<8x8xf32>
    %66 = vector.multi_reduction <add>, %65, %cst_35 [2] : vector<8x8x8xf32> to vector<8x8xf32>
    %cst_36 = arith.constant dense<0.000000e+00> : vector<8x128xf32>
    %67 = tpu.matmul %66, %61, %cst_36 {dimension_numbers = #tpu.dot_dimension_numbers<[1], [0], [0], [1], [0, 0, 1, 1], [], []>} : vector<8x8xf32>, vector<8x128xf32>, vector<8x128xf32> -> vector<8x128xf32>
    %68 = vector.broadcast %1 : vector<8x1xf32> to vector<8x128xf32>
    %69 = arith.addf %67, %68 : vector<8x128xf32>
    %70 = arith.index_cast %c3_i32 : i32 to index
    %c0_37 = arith.constant 0 : index
    %c0_38 = arith.constant 0 : index
    %71 = vector.load %arg5[%70, %c0_37, %c0_38] : memref<6x8x128xf32, #tpu.memory_space<vmem>>, vector<1x8x128xf32>
    %72 = vector.shape_cast %71 : vector<1x8x128xf32> to vector<8x128xf32>
    %73 = vector.shape_cast %69 : vector<8x128xf32> to vector<1x8x128xf32>
    tpu.vector_store %arg5[%70, %c0_37, %c0_38], %73 {strides = array<i32>} : memref<6x8x128xf32, #tpu.memory_space<vmem>>, vector<1x8x128xf32>,
    %c4_i32 = arith.constant 4 : i32
    %74 = arith.index_cast %c4_i32 : i32 to index
    %c0_39 = arith.constant 0 : index
    %c0_40 = arith.constant 0 : index
    %75 = vector.load %arg1[%74, %c0_39, %c0_40] : memref<6x8x128xf32, #tpu.memory_space<vmem>>, vector<1x8x128xf32>
    %76 = vector.shape_cast %75 : vector<1x8x128xf32> to vector<8x128xf32>
    %77 = arith.index_cast %c4_i32 : i32 to index
    %c0_41 = arith.constant 0 : index
    %c0_42 = arith.constant 0 : index
    %78 = vector.load %arg2[%77, %c0_41, %c0_42] : memref<6x8x128xf32, #tpu.memory_space<vmem>>, vector<1x8x128xf32>
    %79 = vector.shape_cast %78 : vector<1x8x128xf32> to vector<8x128xf32>
    %cst_43 = arith.constant dense<0.000000e+00> : vector<8x8xf32>
    %80 = tpu.matmul %79, %76, %cst_43 {dimension_numbers = #tpu.dot_dimension_numbers<[1], [1], [0], [0], [0, 0, 1, 0], [], []>} : vector<8x128xf32>, vector<8x128xf32>, vector<8x8xf32> -> vector<8x8xf32>
    %81 = vector.shape_cast %80 : vector<8x8xf32> to vector<1x8x8xf32>
    %82 = vector.broadcast %81 : vector<1x8x8xf32> to vector<8x8x8xf32>
    %83 = arith.mulf %0, %82 : vector<8x8x8xf32>
    %cst_44 = arith.constant dense<0.000000e+00> : vector<8x8xf32>
    %84 = vector.multi_reduction <add>, %83, %cst_44 [2] : vector<8x8x8xf32> to vector<8x8xf32>
    %cst_45 = arith.constant dense<0.000000e+00> : vector<8x128xf32>
    %85 = tpu.matmul %84, %79, %cst_45 {dimension_numbers = #tpu.dot_dimension_numbers<[1], [0], [0], [1], [0, 0, 1, 1], [], []>} : vector<8x8xf32>, vector<8x128xf32>, vector<8x128xf32> -> vector<8x128xf32>
    %86 = vector.broadcast %1 : vector<8x1xf32> to vector<8x128xf32>
    %87 = arith.addf %85, %86 : vector<8x128xf32>
    %88 = arith.index_cast %c4_i32 : i32 to index
    %c0_46 = arith.constant 0 : index
    %c0_47 = arith.constant 0 : index
    %89 = vector.load %arg5[%88, %c0_46, %c0_47] : memref<6x8x128xf32, #tpu.memory_space<vmem>>, vector<1x8x128xf32>
    %90 = vector.shape_cast %89 : vector<1x8x128xf32> to vector<8x128xf32>
    %91 = vector.shape_cast %87 : vector<8x128xf32> to vector<1x8x128xf32>
    tpu.vector_store %arg5[%88, %c0_46, %c0_47], %91 {strides = array<i32>} : memref<6x8x128xf32, #tpu.memory_space<vmem>>, vector<1x8x128xf32>,
    %c5_i32 = arith.constant 5 : i32
    %92 = arith.index_cast %c5_i32 : i32 to index
    %c0_48 = arith.constant 0 : index
    %c0_49 = arith.constant 0 : index
    %93 = vector.load %arg1[%92, %c0_48, %c0_49] : memref<6x8x128xf32, #tpu.memory_space<vmem>>, vector<1x8x128xf32>
    %94 = vector.shape_cast %93 : vector<1x8x128xf32> to vector<8x128xf32>
    %95 = arith.index_cast %c5_i32 : i32 to index
    %c0_50 = arith.constant 0 : index
    %c0_51 = arith.constant 0 : index
    %96 = vector.load %arg2[%95, %c0_50, %c0_51] : memref<6x8x128xf32, #tpu.memory_space<vmem>>, vector<1x8x128xf32>
    %97 = vector.shape_cast %96 : vector<1x8x128xf32> to vector<8x128xf32>
    %cst_52 = arith.constant dense<0.000000e+00> : vector<8x8xf32>
    %98 = tpu.matmul %97, %94, %cst_52 {dimension_numbers = #tpu.dot_dimension_numbers<[1], [1], [0], [0], [0, 0, 1, 0], [], []>} : vector<8x128xf32>, vector<8x128xf32>, vector<8x8xf32> -> vector<8x8xf32>
    %99 = vector.shape_cast %98 : vector<8x8xf32> to vector<1x8x8xf32>
    %100 = vector.broadcast %99 : vector<1x8x8xf32> to vector<8x8x8xf32>
    %101 = arith.mulf %0, %100 : vector<8x8x8xf32>
    %cst_53 = arith.constant dense<0.000000e+00> : vector<8x8xf32>
    %102 = vector.multi_reduction <add>, %101, %cst_53 [2] : vector<8x8x8xf32> to vector<8x8xf32>
    %cst_54 = arith.constant dense<0.000000e+00> : vector<8x128xf32>
    %103 = tpu.matmul %102, %97, %cst_54 {dimension_numbers = #tpu.dot_dimension_numbers<[1], [0], [0], [1], [0, 0, 1, 1], [], []>} : vector<8x8xf32>, vector<8x128xf32>, vector<8x128xf32> -> vector<8x128xf32>
    %104 = vector.broadcast %1 : vector<8x1xf32> to vector<8x128xf32>
    %105 = arith.addf %103, %104 : vector<8x128xf32>
    %106 = arith.index_cast %c5_i32 : i32 to index
    %c0_55 = arith.constant 0 : index
    %c0_56 = arith.constant 0 : index
    %107 = vector.load %arg5[%106, %c0_55, %c0_56] : memref<6x8x128xf32, #tpu.memory_space<vmem>>, vector<1x8x128xf32>
    %108 = vector.shape_cast %107 : vector<1x8x128xf32> to vector<8x128xf32>
    %109 = vector.shape_cast %105 : vector<8x128xf32> to vector<1x8x128xf32>
    tpu.vector_store %arg5[%106, %c0_55, %c0_56], %109 {strides = array<i32>} : memref<6x8x128xf32, #tpu.memory_space<vmem>>, vector<1x8x128xf32>,
    %c6_i32 = arith.constant 6 : i32
    return
  }
  func.func @transform_0(%arg0: i32) -> (i32, i32, i32) {
    %c0_i32 = arith.constant 0 : i32
    %c0_i32_0 = arith.constant 0 : i32
    %c0_i32_1 = arith.constant 0 : i32
    return %arg0, %c0_i32, %c0_i32_0 : i32, i32, i32
  }
  func.func @transform_1(%arg0: i32) -> (i32, i32, i32) {
    %c0_i32 = arith.constant 0 : i32
    %c0_i32_0 = arith.constant 0 : i32
    %c0_i32_1 = arith.constant 0 : i32
    return %arg0, %c0_i32, %c0_i32_0 : i32, i32, i32
  }
  func.func @transform_2(%arg0: i32) -> (i32, i32, i32) {
    %c0_i32 = arith.constant 0 : i32
    %c0_i32_0 = arith.constant 0 : i32
    %c0_i32_1 = arith.constant 0 : i32
    %c0_i32_2 = arith.constant 0 : i32
    return %c0_i32, %c0_i32_0, %c0_i32_1 : i32, i32, i32
  }
  func.func @transform_3(%arg0: i32) -> (i32, i32) {
    %c0_i32 = arith.constant 0 : i32
    %c0_i32_0 = arith.constant 0 : i32
    %c0_i32_1 = arith.constant 0 : i32
    return %c0_i32, %c0_i32_0 : i32, i32
  }
  func.func @transform_4(%arg0: i32) -> (i32, i32, i32) {
    %c0_i32 = arith.constant 0 : i32
    %c0_i32_0 = arith.constant 0 : i32
    %c0_i32_1 = arith.constant 0 : i32
    return %arg0, %c0_i32, %c0_i32_0 : i32, i32, i32
  }
}

</mosaic_0001>

<bundles_post_ra>
// kernel: tpu_custom_call.1
= control target key start
LH: loop header
LB: loop body
LE: loop exit
PB: predicated region body
PF: predicated region fallthrough
CT: control target
= control target key end

     0   :  { %9 = vsyncpa [#allocation3], 0  ;;  %s2043_s0 = inlined_call_operand.hbm [shape: f32[6,8,128], index: 0, kind: input, shape index: {}]   ;;  %s2044_s1 = inlined_call_operand.hbm [shape: f32[6,8,128], index: 1, kind: input, shape index: {}]   ;;  %s2045_s2 = inlined_call_operand.hbm [shape: f32[8,8,8], index: 2, kind: input, shape index: {}]   ;;  %s2046_s3 = inlined_call_operand.vmem [shape: f32[8,1], index: 3, kind: input, shape index: {}]   ;;  %s2047_s4 = inlined_call_operand.hbm [shape: f32[6,8,128], index: 4, kind: output, shape index: {}]  }
   0x1   :  { %10 = vsyncpa [#allocation6], 0 }
   0x2   :  { %11 = vsyncpa [#allocation4], 0  ;;  %s1654_s15 = smov [#allocation5]   ;;  %s1655_s17 = smov [#allocation2]  }
   0x3   :  { %s29_s16 = sshll.u32 %s1654_s15, 4  ;;  %s17_s18 = sshll.u32 %s1655_s17, 4  ;;  %s30_s16 = int_to_ptr.vmem [resolvable:$true] %s29_s16  ;;  %s1688_s18 = int_to_ptr.vmem [resolvable:$true] %s17_s18 }
   0x4   :  { %s1560_s21 = scalar_lea.hbm %s2044_s1, 768 }
   0x5   :  { %p1561_p0 = scmp.ne.s32.totalorder %s2044_s1, %s1560_s21  ;;  %p1564_p1 = scmp.lt.u32.totalorder %s1560_s21, %s2044_s1 }
   0x7   :  { %p1566_p2 = pnand %p1564_p1, %p1561_p0 }
   0x9   :  { %1569 = shalt.err (!%p1566_p2)
}
   0xa   :  { %s1570_s26 = scalar_lea.vmem %s30_s16, 768  ;;  %p1575_p4 = scmp.lt.s32.totalorder %s30_s16, %s30_s16 }
   0xb   :  { %p1571_p3 = scmp.ne.s32.totalorder %s30_s16, %s1570_s26  ;;  %p1576_p5 = scmp.lt.s32.totalorder %s1570_s26, %s1570_s26 }
   0xd   :  { %p1577_p6 = por %p1576_p5, %p1575_p4 }
   0xf   :  { %p1578_p7 = pnand %p1577_p6, %p1571_p3 }
  0x11   :  { %1581 = shalt.err (!%p1578_p7)
}
  0x12   :  { %s1656_s27 = smov 128   ;;  %s1657_s28 = smov 8  }
  0x13   :  { %35 = dma.hbm_to_vmem [thread:$0]  %s2044_s1, 768, %s30_s16, [#allocation6], %s1656_s27, %s1656_s27, %s1657_s28  }
  0x14   :  { %s1582_s7 = scalar_lea.hbm %s2043_s0, 768 }
  0x15   :  { %p1583_p8 = scmp.ne.s32.totalorder %s2043_s0, %s1582_s7  ;;  %p1586_p9 = scmp.lt.u32.totalorder %s1582_s7, %s2043_s0 }
  0x17   :  { %p1588_p10 = pnand %p1586_p9, %p1583_p8 }
  0x19   :  { %1591 = shalt.err (!%p1588_p10)
}
  0x1a   :  { %s1592_s12 = scalar_lea.vmem %s1688_s18, 768  ;;  %p1597_p12 = scmp.lt.s32.totalorder %s1688_s18, %s1688_s18 }
  0x1b   :  { %p1593_p11 = scmp.ne.s32.totalorder %s1688_s18, %s1592_s12  ;;  %p1598_p13 = scmp.lt.s32.totalorder %s1592_s12, %s1592_s12 }
  0x1d   :  { %p1599_p0 = por %p1598_p13, %p1597_p12 }
  0x1f   :  { %p1600_p1 = pnand %p1599_p0, %p1593_p11 }
  0x21   :  { %1603 = shalt.err (!%p1600_p1)
}
  0x22   :  { %23 = dma.hbm_to_vmem [thread:$0]  %s2043_s0, 768, %s1688_s18, [#allocation3], %s1656_s27, %s1656_s27, %s1657_s28  }
  0x23   :  { %s1658_s14 = smov [#allocation7]   ;;  %s1604_s19 = scalar_lea.hbm %s2045_s2, 1024 }
  0x24   :  { %s41_s15 = sshll.u32 %s1658_s14, 4  ;;  %p1605_p2 = scmp.ne.s32.totalorder %s2045_s2, %s1604_s19  ;;  %s42_s15 = int_to_ptr.vmem [resolvable:$true] %s41_s15 }
  0x25   :  { %p1608_p3 = scmp.lt.u32.totalorder %s1604_s19, %s2045_s2 }
  0x27   :  { %p1610_p4 = pnand %p1608_p3, %p1605_p2 }
  0x29   :  { %1613 = shalt.err (!%p1610_p4)
}
  0x2a   :  { %s1614_s24 = scalar_lea.vmem %s42_s15, 1024  ;;  %p1619_p6 = scmp.lt.s32.totalorder %s42_s15, %s42_s15 }
  0x2b   :  { %p1615_p5 = scmp.ne.s32.totalorder %s42_s15, %s1614_s24  ;;  %p1620_p7 = scmp.lt.s32.totalorder %s1614_s24, %s1614_s24 }
  0x2d   :  { %p1621_p8 = por %p1620_p7, %p1619_p6 }
  0x2f   :  { %p1622_p9 = pnand %p1621_p8, %p1615_p5 }
  0x31   :  { %1625 = shalt.err (!%p1622_p9)
}
  0x32   :  { %47 = dma.hbm_to_vmem [thread:$0]  %s2045_s2, 1024, %s42_s15, [#allocation6], %s1656_s27, %s1656_s27, %s1657_s28  }
  0x33   :  { %1648 = dma.done.wait [#allocation3], 768  }
  0x34   :  { %1649 = vsyncadd [#allocation3], 4294966528 }
  0x35   :  { %1650 = dma.done.wait [#allocation6], 1792  }
  0x36   :  { %1651 = vsyncadd [#allocation6], 4294965504  ;;  %v1659_v0 = vmov 0.0   ;;  %vm1660_vm0 = vmmov 0   ;;  %v68_v1 = vld [vmem:[#allocation2] sm:$0xff]  ;;  %v69_v2 = vld [vmem:[#allocation5] sm:$0xff]  ;;  %v186_v30 = vlaneseq }
  0x37   :  { %1490 = vmatprep.subr.mxu0 %v1659_v0  ;;  %1492 = vmatprep.mubr.msk.f32.mxu0 %vm1660_vm0, %v1659_v0  ;;  %v1750_v3 = vld [vmem:[#allocation7 + $0x10] sm:$0xff]  ;;  %v1752_v4 = vld [vmem:[#allocation7] sm:$0xff]  ;;  %vm148_vm1 = vcmask 64512   ;;  %v1754_v6 = vld [vmem:[#allocation7 + $0x18] sm:$0xff]  ;;  %vm220_vm2 = vcmask 1041409   ;;  %vm222_vm3 = vcmask 1042434  }
  0x38   :  { %1495 = vmatprep.subr.mxu1 %v1659_v0  ;;  %1497 = vmatprep.mubr.msk.f32.mxu1 %vm1660_vm0, %v1659_v0  ;;  %v1756_v7 = vld [vmem:[#allocation7 + $0x8] sm:$0xff]  ;;  %v1766_v16 = vld [vmem:[#allocation7 + $0x20] sm:$0xff]  ;;  %v1772_v21 = vld [vmem:[#allocation7 + $0x38] sm:$0xff]  ;;  %v187_v31 = vand.u32 127, %v186_v30  ;;  %v189_v32 = vshrl.u32 %v186_v30, 7  ;;  %vm224_vm4 = vcmask 1043459  }
  0x39   :  { %1491 = vmatpush3.xpose.msra.mxu0 %v68_v1  ;;  %1496 = vmatpush3.msra.mxu1 %v69_v2  ;;  %v1764_v15 = vld [vmem:[#allocation7 + $0x28] sm:$0xff]  ;;  %v1774_v22 = vld [vmem:[#allocation7 + $0x30] sm:$0xff]  ;;  %v310_v29 = vld [vmem:[#allocation5 + $0x8] sm:$0xff]  ;;  %vm226_vm5 = vcmask 1044484   ;;  %vm228_vm6 = vcmask 1045509   ;;  %vm230_vm7 = vcmask 1046534  }
  0x3a   :  { %1500 = vmatprep.subr.mxu1 %v1659_v0  ;;  %1505 = vmatprep.subr.mxu0 %v1659_v0  ;;  %v1783_v35 = vsub.s32 %v187_v31, %v189_v32  ;;  %vm232_vm8 = vcmask 1047559   ;;  %v308_v56 = vld [vmem:[#allocation2 + $0x8] sm:$0xff]  ;;  %v535_v58 = vld [vmem:[#allocation2 + $0x10] sm:$0xff]  ;;  %v1806_v59 = vld [vmem:[#allocation5 + $0x10] sm:$0xff] }
  0x3b   :  { %v762_v60 = vld [vmem:[#allocation2 + $0x18] sm:$0xff]  ;;  %v1812_v61 = vld [vmem:[#allocation5 + $0x18] sm:$0xff]  ;;  %v989_v62 = vld [vmem:[#allocation2 + $0x20] sm:$0xff] }
  0x3c   :  { %1493 = vmatmul.mubr.f32.vlgmr.msra.gmra.mrb[0].mxu0 %v69_v2  ;;  %v1818_v63 = vld [vmem:[#allocation5 + $0x20] sm:$0xff]  ;;  %v1216_v1 = vld [vmem:[#allocation2 + $0x28] sm:$0xff]  ;;  %v1824_v2 = vld [vmem:[#allocation5 + $0x28] sm:$0xff] }
  0x3d   :  { %1507 = vmatprep.mubr.msk.f32.mxu0 %vm1660_vm0, %v1659_v0  ;;  %1506 = vmatpush3.msra.mxu0 %v310_v29 }
  0x3e   :  { %1515 = vmatprep.subr.mxu0 %v1659_v0 }
 0x10f   :  { %v136_v5 = vpop.f32.mrb[0].mxu0 }
 0x110   :  { %v1494_v8 = vpop.f32.mrb[1].mxu0  ;;  %v142_v9 = vmul.f32 %v136_v5, %v1750_v3  ;;  %v140_v10 = vmul.f32 %v136_v5, %v1752_v4  ;;  %v143_v13 = vmul.f32 %v136_v5, %v1754_v6  ;;  %v141_v14 = vmul.f32 %v136_v5, %v1756_v7 }
 0x111   :  { %v145_v19 = vmul.f32 %v136_v5, %v1764_v15  ;;  %v144_v20 = vmul.f32 %v136_v5, %v1766_v16  ;;  %v147_v25 = vmul.f32 %v136_v5, %v1772_v21  ;;  %v146_v26 = vmul.f32 %v136_v5, %v1774_v22 }
 0x112   :  { %v155_v11 = vsel %vm148_vm1, %v142_v9, 0.0  ;;  %v149_v12 = vsel %vm148_vm1, %v140_v10, 0.0  ;;  %v158_v17 = vsel %vm148_vm1, %v143_v13, 0.0  ;;  %v152_v18 = vsel %vm148_vm1, %v141_v14, 0.0 }
 0x113   :  { %156 = vadd.xlane.f32.xlu1 %v155_v11  ;;  %150 = vadd.xlane.f32.xlu0 %v149_v12  ;;  %v164_v23 = vsel %vm148_vm1, %v145_v19, 0.0  ;;  %v161_v24 = vsel %vm148_vm1, %v144_v20, 0.0  ;;  %v170_v27 = vsel %vm148_vm1, %v147_v25, 0.0  ;;  %v167_v28 = vsel %vm148_vm1, %v146_v26, 0.0 }
 0x114   :  { %v1661_v5 = vmov 0  }
 0x115   :  { %1559 = vset.pattern.permute.xlu0 %v1661_v5 }
 0x117   :  { %159 = vadd.xlane.f32.xlu1 %v158_v17  ;;  %153 = vadd.xlane.f32.xlu0 %v152_v18 }
 0x11b   :  { %165 = vadd.xlane.f32.xlu1 %v164_v23  ;;  %162 = vadd.xlane.f32.xlu0 %v161_v24 }
 0x11f   :  { %171 = vadd.xlane.f32.xlu1 %v170_v27  ;;  %168 = vadd.xlane.f32.xlu0 %v167_v28 }
 0x1a0   :  { %v157_v33 = vpop.xlane.xlu1 %156  ;;  %v151_v34 = vpop.xlane.xlu0 %150 }
 0x1a1   :  { %v191_v38 = vrot.slane %v151_v34, %v1783_v35  ;;  %v199_v40 = vrot.slane %v157_v33, %v1783_v35 }
 0x1a4   :  { %v160_v36 = vpop.xlane.xlu1 %159  ;;  %v154_v37 = vpop.xlane.xlu0 %153 }
 0x1a5   :  { %v195_v39 = vrot.slane %v154_v37, %v1783_v35  ;;  %v203_v41 = vrot.slane %v160_v36, %v1783_v35 }
 0x1a7   :  { %v221_v42 = vsel %vm220_vm2, %v195_v39, %v191_v38 }
 0x1a8   :  { %v223_v43 = vsel %vm222_vm3, %v199_v40, %v221_v42  ;;  %v166_v44 = vpop.xlane.xlu1 %165  ;;  %v163_v45 = vpop.xlane.xlu0 %162 }
 0x1a9   :  { %v225_v46 = vsel %vm224_vm4, %v203_v41, %v223_v43  ;;  %v207_v47 = vrot.slane %v163_v45, %v1783_v35  ;;  %v211_v48 = vrot.slane %v166_v44, %v1783_v35 }
 0x1ab   :  { %v227_v49 = vsel %vm226_vm5, %v207_v47, %v225_v46 }
 0x1ac   :  { %v172_v50 = vpop.xlane.xlu1 %171  ;;  %v169_v51 = vpop.xlane.xlu0 %168  ;;  %v229_v54 = vsel %vm228_vm6, %v211_v48, %v227_v49 }
 0x1ad   :  { %v219_v52 = vrot.slane %v172_v50, %v1783_v35  ;;  %v215_v53 = vrot.slane %v169_v51, %v1783_v35 }
 0x1af   :  { %v231_v55 = vsel %vm230_vm7, %v215_v53, %v229_v54 }
 0x1b0   :  { %v233_v57 = vsel %vm232_vm8, %v219_v52, %v231_v55 }
 0x1b1   :  { %1498 = vmatmul.mubr.msk.f32.vlgmr.msra.gmra.mrb[0].mxu1 %vm148_vm1, %v233_v57 }
 0x1b2   :  { %1501 = vmatpush3.xpose.msra.mxu1 %v308_v56  ;;  %1502 = vmatprep.mubr.msk.f32.mxu1 %vm1660_vm0, %v1659_v0 }
 0x1b3   :  { %1510 = vmatprep.subr.mxu1 %v1659_v0 }
 0x1b5   :  { %1503 = vmatmul.mubr.f32.vlgmr.msra.gmra.mrb[2].mxu1 %v310_v29 }
 0x1b6   :  { %1511 = vmatpush3.xpose.msra.mxu1 %v535_v58  ;;  %1512 = vmatprep.mubr.msk.f32.mxu1 %vm1660_vm0, %v1659_v0 }
 0x1b7   :  { %1520 = vmatprep.subr.mxu1 %v1659_v0 }
 0x1b9   :  { %1513 = vmatmul.mubr.f32.vlgmr.msra.gmra.mrb[4].mxu1 %v1806_v59 }
 0x1ba   :  { %1521 = vmatpush3.xpose.msra.mxu1 %v762_v60  ;;  %1522 = vmatprep.mubr.msk.f32.mxu1 %vm1660_vm0, %v1659_v0 }
 0x1bb   :  { %1530 = vmatprep.subr.mxu1 %v1659_v0 }
 0x1bd   :  { %1523 = vmatmul.mubr.f32.vlgmr.msra.gmra.mrb[6].mxu1 %v1812_v61 }
 0x1be   :  { %1531 = vmatpush3.xpose.msra.mxu1 %v989_v62  ;;  %1532 = vmatprep.mubr.msk.f32.mxu1 %vm1660_vm0, %v1659_v0 }
 0x1bf   :  { %1540 = vmatprep.subr.mxu1 %v1659_v0 }
 0x1c1   :  { %1533 = vmatmul.mubr.f32.vlgmr.msra.gmra.mrb[8].mxu1 %v1818_v63 }
 0x1c2   :  { %1541 = vmatpush3.xpose.msra.mxu1 %v1216_v1  ;;  %1542 = vmatprep.mubr.msk.f32.mxu1 %vm1660_vm0, %v1659_v0 }
 0x1c5   :  { %1543 = vmatmul.mubr.f32.vlgmr.msra.gmra.mrb[10].mxu1 %v1824_v2 }
 0x284   :  { %v1827_v8 = vpop.f32.mrb[0].mxu1 }
 0x285   :  { %v1499_v9 = vpop.f32.mrb[1].mxu1 }
 0x288   :  { %v377_v10 = vpop.f32.mrb[2].mxu1 }
 0x289   :  { %v1504_v11 = vpop.f32.mrb[3].mxu1  ;;  %v382_v12 = vmul.f32 %v377_v10, %v1756_v7  ;;  %v381_v13 = vmul.f32 %v377_v10, %v1752_v4  ;;  %v384_v18 = vmul.f32 %v377_v10, %v1754_v6  ;;  %v383_v19 = vmul.f32 %v377_v10, %v1750_v3 }
 0x28a   :  { %v386_v26 = vmul.f32 %v377_v10, %v1764_v15  ;;  %v385_v27 = vmul.f32 %v377_v10, %v1766_v16  ;;  %v387_v33 = vmul.f32 %v377_v10, %v1774_v22  ;;  %v388_v39 = vmul.f32 %v377_v10, %v1772_v21 }
 0x28b   :  { %v392_v14 = vsel %vm148_vm1, %v382_v12, 0.0  ;;  %v389_v17 = vsel %vm148_vm1, %v381_v13, 0.0  ;;  %v398_v24 = vsel %vm148_vm1, %v384_v18, 0.0  ;;  %v395_v25 = vsel %vm148_vm1, %v383_v19, 0.0 }
 0x28c   :  { %393 = vadd.xlane.f32.xlu1 %v392_v14  ;;  %390 = vadd.xlane.f32.xlu0 %v389_v17  ;;  %v604_v20 = vpop.f32.mrb[4].mxu1  ;;  %v404_v31 = vsel %vm148_vm1, %v386_v26, 0.0  ;;  %v401_v32 = vsel %vm148_vm1, %v385_v27, 0.0  ;;  %v407_v38 = vsel %vm148_vm1, %v387_v33, 0.0  ;;  %v410_v43 = vsel %vm148_vm1, %v388_v39, 0.0 }
 0x28d   :  { %v1514_v23 = vpop.f32.mrb[5].mxu1  ;;  %v609_v29 = vmul.f32 %v604_v20, %v1756_v7  ;;  %v610_v40 = vmul.f32 %v604_v20, %v1750_v3  ;;  %v611_v45 = vmul.f32 %v604_v20, %v1754_v6  ;;  %v608_v46 = vmul.f32 %v604_v20, %v1752_v4 }
 0x28e   :  { %v613_v49 = vmul.f32 %v604_v20, %v1764_v15  ;;  %v612_v50 = vmul.f32 %v604_v20, %v1766_v16  ;;  %v614_v54 = vmul.f32 %v604_v20, %v1774_v22  ;;  %v615_v57 = vmul.f32 %v604_v20, %v1772_v21 }
 0x28f   :  { %v619_v36 = vsel %vm148_vm1, %v609_v29, 0.0  ;;  %v622_v44 = vsel %vm148_vm1, %v610_v40, 0.0  ;;  %v625_v47 = vsel %vm148_vm1, %v611_v45, 0.0  ;;  %v616_v48 = vsel %vm148_vm1, %v608_v46, 0.0 }
 0x290   :  { %399 = vadd.xlane.f32.xlu1 %v398_v24  ;;  %396 = vadd.xlane.f32.xlu0 %v395_v25  ;;  %v831_v28 = vpop.f32.mrb[6].mxu1  ;;  %v631_v52 = vsel %vm148_vm1, %v613_v49, 0.0  ;;  %v628_v53 = vsel %vm148_vm1, %v612_v50, 0.0  ;;  %v634_v56 = vsel %vm148_vm1, %v614_v54, 0.0  ;;  %v637_v60 = vsel %vm148_vm1, %v615_v57, 0.0 }
 0x291   :  { %v1524_v30 = vpop.f32.mrb[7].mxu1  ;;  %v836_v51 = vmul.f32 %v831_v28, %v1756_v7  ;;  %v837_v58 = vmul.f32 %v831_v28, %v1750_v3  ;;  %v838_v1 = vmul.f32 %v831_v28, %v1754_v6  ;;  %v835_v5 = vmul.f32 %v831_v28, %v1752_v4 }
 0x292   :  { %v840_v11 = vmul.f32 %v831_v28, %v1764_v15  ;;  %v839_v12 = vmul.f32 %v831_v28, %v1766_v16  ;;  %v841_v18 = vmul.f32 %v831_v28, %v1774_v22  ;;  %v842_v23 = vmul.f32 %v831_v28, %v1772_v21 }
 0x293   :  { %v846_v55 = vsel %vm148_vm1, %v836_v51, 0.0  ;;  %v849_v62 = vsel %vm148_vm1, %v837_v58, 0.0  ;;  %v852_v9 = vsel %vm148_vm1, %v838_v1, 0.0  ;;  %v843_v10 = vsel %vm148_vm1, %v835_v5, 0.0 }
 0x294   :  { %405 = vadd.xlane.f32.xlu1 %v404_v31  ;;  %402 = vadd.xlane.f32.xlu0 %v401_v32  ;;  %v1843_v34 = vpop.f32.mrb[8].mxu1  ;;  %v858_v14 = vsel %vm148_vm1, %v840_v11, 0.0  ;;  %v855_v17 = vsel %vm148_vm1, %v839_v12, 0.0  ;;  %v861_v20 = vsel %vm148_vm1, %v841_v18, 0.0  ;;  %v864_v25 = vsel %vm148_vm1, %v842_v23, 0.0 }
 0x295   :  { %v1534_v37 = vpop.f32.mrb[9].mxu1  ;;  %v1063_v13 = vmul.f32 %v1843_v34, %v1756_v7  ;;  %v1064_v24 = vmul.f32 %v1843_v34, %v1750_v3  ;;  %v1065_v27 = vmul.f32 %v1843_v34, %v1754_v6  ;;  %v1062_v29 = vmul.f32 %v1843_v34, %v1752_v4 }
 0x296   :  { %v1067_v31 = vmul.f32 %v1843_v34, %v1764_v15  ;;  %v1066_v32 = vmul.f32 %v1843_v34, %v1766_v16 }
 0x297   :  { %v1073_v19 = vsel %vm148_vm1, %v1063_v13, 0.0  ;;  %v1076_v26 = vsel %vm148_vm1, %v1064_v24, 0.0  ;;  %v1079_v30 = vsel %vm148_vm1, %v1065_v27, 0.0  ;;  %v1070_v28 = vsel %vm148_vm1, %v1062_v29, 0.0 }
 0x298   :  { %408 = vadd.xlane.f32.xlu0 %v407_v38  ;;  %620 = vadd.xlane.f32.xlu1 %v619_v36  ;;  %v1849_v41 = vpop.f32.mrb[10].mxu1  ;;  %v1085_v36 = vsel %vm148_vm1, %v1067_v31, 0.0  ;;  %v1082_v37 = vsel %vm148_vm1, %v1066_v32, 0.0  ;;  %v1068_v38 = vmul.f32 %v1843_v34, %v1774_v22 }
 0x299   :  { %v1544_v42 = vpop.f32.mrb[11].mxu1  ;;  %v1290_v33 = vmul.f32 %v1849_v41, %v1756_v7  ;;  %v1292_v45 = vmul.f32 %v1849_v41, %v1754_v6  ;;  %v1289_v46 = vmul.f32 %v1849_v41, %v1752_v4  ;;  %v1296_v4 = vmul.f32 %v1849_v41, %v1772_v21 }
 0x29a   :  { %v1088_v40 = vsel %vm148_vm1, %v1068_v38, 0.0  ;;  %v1069_v42 = vmul.f32 %v1843_v34, %v1772_v21  ;;  %v1295_v50 = vmul.f32 %v1849_v41, %v1774_v22 }
 0x29b   :  { %v1300_v39 = vsel %vm148_vm1, %v1290_v33, 0.0  ;;  %v1297_v34 = vsel %vm148_vm1, %v1289_v46, 0.0  ;;  %v1318_v51 = vsel %vm148_vm1, %v1296_v4, 0.0 }
 0x29c   :  { %411 = vadd.xlane.f32.xlu0 %v410_v43  ;;  %623 = vadd.xlane.f32.xlu1 %v622_v44  ;;  %v1291_v43 = vmul.f32 %v1849_v41, %v1750_v3  ;;  %v1091_v7 = vsel %vm148_vm1, %v1069_v42, 0.0  ;;  %v1294_v3 = vmul.f32 %v1849_v41, %v1764_v15  ;;  %v1315_v15 = vsel %vm148_vm1, %v1295_v50, 0.0 }
 0x29e   :  { %v1303_v44 = vsel %vm148_vm1, %v1291_v43, 0.0  ;;  %v1312_v49 = vsel %vm148_vm1, %v1294_v3, 0.0 }
 0x2a0   :  { %626 = vadd.xlane.f32.xlu1 %v625_v47  ;;  %617 = vadd.xlane.f32.xlu0 %v616_v48  ;;  %v1306_v47 = vsel %vm148_vm1, %v1292_v45, 0.0  ;;  %v1293_v48 = vmul.f32 %v1849_v41, %v1766_v16  ;;  %v67_v16 = vld [vmem:[%s2046_s3] sm:$0xff]  ;;  %s1662_s3 = smov [#allocation8]  }
 0x2a1   :  { %s1447_s26 = sshll.u32 %s1662_s3, 4  ;;  %s1448_s26 = int_to_ptr.vmem [resolvable:$true] %s1447_s26 }
 0x2a2   :  { %v1309_v6 = vsel %vm148_vm1, %v1293_v48, 0.0  ;;  %s1626_s29 = scalar_lea.vmem %s1448_s26, 768  ;;  %p1631_p11 = scmp.lt.s32.totalorder %s1448_s26, %s1448_s26 }
 0x2a3   :  { %p1627_p10 = scmp.ne.s32.totalorder %s1448_s26, %s1626_s29  ;;  %p1632_p12 = scmp.lt.s32.totalorder %s1626_s29, %s1626_s29 }
 0x2a4   :  { %632 = vadd.xlane.f32.xlu1 %v631_v52  ;;  %629 = vadd.xlane.f32.xlu0 %v628_v53 }
 0x2a5   :  { %p1633_p13 = por %p1632_p12, %p1631_p11 }
 0x2a7   :  { %p1634_p0 = pnand %p1633_p13, %p1627_p10 }
 0x2a8   :  { %635 = vadd.xlane.f32.xlu0 %v634_v56  ;;  %847 = vadd.xlane.f32.xlu1 %v846_v55 }
 0x2ac   :  { %638 = vadd.xlane.f32.xlu0 %v637_v60  ;;  %850 = vadd.xlane.f32.xlu1 %v849_v62 }
 0x2b0   :  { %853 = vadd.xlane.f32.xlu1 %v852_v9  ;;  %844 = vadd.xlane.f32.xlu0 %v843_v10 }
 0x2b4   :  { %859 = vadd.xlane.f32.xlu1 %v858_v14  ;;  %856 = vadd.xlane.f32.xlu0 %v855_v17 }
 0x2b8   :  { %862 = vadd.xlane.f32.xlu0 %v861_v20  ;;  %1074 = vadd.xlane.f32.xlu1 %v1073_v19 }
 0x2bc   :  { %865 = vadd.xlane.f32.xlu0 %v864_v25  ;;  %1077 = vadd.xlane.f32.xlu1 %v1076_v26 }
 0x2c0   :  { %1080 = vadd.xlane.f32.xlu1 %v1079_v30  ;;  %1071 = vadd.xlane.f32.xlu0 %v1070_v28 }
 0x2c4   :  { %1086 = vadd.xlane.f32.xlu1 %v1085_v36  ;;  %1083 = vadd.xlane.f32.xlu0 %v1082_v37 }
 0x2c8   :  { %1089 = vadd.xlane.f32.xlu0 %v1088_v40  ;;  %1301 = vadd.xlane.f32.xlu1 %v1300_v39 }
 0x2cc   :  { %1092 = vadd.xlane.f32.xlu0 %v1091_v7  ;;  %1304 = vadd.xlane.f32.xlu1 %v1303_v44 }
 0x2d0   :  { %1307 = vadd.xlane.f32.xlu1 %v1306_v47  ;;  %1298 = vadd.xlane.f32.xlu0 %v1297_v34 }
 0x2d4   :  { %1313 = vadd.xlane.f32.xlu1 %v1312_v49  ;;  %1310 = vadd.xlane.f32.xlu0 %v1309_v6 }
 0x2d8   :  { %1319 = vadd.xlane.f32.xlu1 %v1318_v51  ;;  %1316 = vadd.xlane.f32.xlu0 %v1315_v15 }
 0x2ee   :  { %175 = vperm.xlu0 %1559, %v67_v16  }
 0x319   :  { %v394_v52 = vpop.xlane.xlu1 %393  ;;  %v391_v53 = vpop.xlane.xlu0 %390 }
 0x31a   :  { %v428_v55 = vrot.slane %v394_v52, %v1783_v35  ;;  %v424_v22 = vrot.slane %v391_v53, %v1783_v35 }
 0x31c   :  { %v453_v58 = vsel %vm220_vm2, %v428_v55, %v424_v22 }
 0x31d   :  { %v400_v54 = vpop.xlane.xlu1 %399  ;;  %v397_v21 = vpop.xlane.xlu0 %396 }
 0x31e   :  { %v432_v41 = vrot.slane %v397_v21, %v1783_v35  ;;  %v436_v60 = vrot.slane %v400_v54, %v1783_v35 }
 0x320   :  { %v454_v62 = vsel %vm222_vm3, %v432_v41, %v453_v58 }
 0x321   :  { %v406_v56 = vpop.xlane.xlu1 %405  ;;  %v403_v57 = vpop.xlane.xlu0 %402  ;;  %v455_v11 = vsel %vm224_vm4, %v436_v60, %v454_v62 }
 0x322   :  { %v440_v1 = vrot.slane %v403_v57, %v1783_v35  ;;  %v444_v10 = vrot.slane %v406_v56, %v1783_v35 }
 0x324   :  { %v456_v12 = vsel %vm226_vm5, %v440_v1, %v455_v11 }
 0x325   :  { %v409_v5 = vpop.xlane.xlu0 %408  ;;  %v621_v9 = vpop.xlane.xlu1 %620  ;;  %v457_v18 = vsel %vm228_vm6, %v444_v10, %v456_v12 }
 0x326   :  { %v448_v13 = vrot.slane %v409_v5, %v1783_v35  ;;  %v655_v26 = vrot.slane %v621_v9, %v1783_v35 }
 0x328   :  { %v458_v20 = vsel %vm230_vm7, %v448_v13, %v457_v18 }
 0x329   :  { %v412_v14 = vpop.xlane.xlu0 %411  ;;  %v624_v17 = vpop.xlane.xlu1 %623 }
 0x32a   :  { %v452_v19 = vrot.slane %v412_v14, %v1783_v35  ;;  %v659_v29 = vrot.slane %v624_v17, %v1783_v35 }
 0x32c   :  { %v459_v23 = vsel %vm232_vm8, %v452_v19, %v458_v20 }
 0x32d   :  { %1508 = vmatmul.mubr.msk.f32.vlgmr.msra.gmra.mrb[2].mxu0 %vm148_vm1, %v459_v23  ;;  %v627_v24 = vpop.xlane.xlu1 %626  ;;  %v618_v25 = vpop.xlane.xlu0 %617 }
 0x32e   :  { %v651_v27 = vrot.slane %v618_v25, %v1783_v35  ;;  %1516 = vmatpush3.msra.mxu0 %v1806_v59  ;;  %1517 = vmatprep.mubr.msk.f32.mxu0 %vm1660_vm0, %v1659_v0  ;;  %v663_v33 = vrot.slane %v627_v24, %v1783_v35 }
 0x32f   :  { %1525 = vmatprep.subr.mxu0 %v1659_v0 }
 0x330   :  { %v680_v30 = vsel %vm220_vm2, %v655_v26, %v651_v27 }
 0x331   :  { %v681_v28 = vsel %vm222_vm3, %v659_v29, %v680_v30  ;;  %v633_v31 = vpop.xlane.xlu1 %632  ;;  %v630_v32 = vpop.xlane.xlu0 %629 }
 0x332   :  { %v667_v36 = vrot.slane %v630_v32, %v1783_v35  ;;  %v682_v37 = vsel %vm224_vm4, %v663_v33, %v681_v28  ;;  %v671_v39 = vrot.slane %v633_v31, %v1783_v35 }
 0x334   :  { %v683_v40 = vsel %vm226_vm5, %v667_v36, %v682_v37 }
 0x335   :  { %v636_v59 = vpop.xlane.xlu0 %635  ;;  %v848_v38 = vpop.xlane.xlu1 %847  ;;  %v684_v44 = vsel %vm228_vm6, %v671_v39, %v683_v40 }
 0x336   :  { %v675_v42 = vrot.slane %v636_v59, %v1783_v35  ;;  %v882_v48 = vrot.slane %v848_v38, %v1783_v35 }
 0x338   :  { %v685_v46 = vsel %vm230_vm7, %v675_v42, %v684_v44 }
 0x339   :  { %v639_v43 = vpop.xlane.xlu0 %638  ;;  %v851_v7 = vpop.xlane.xlu1 %850 }
 0x33a   :  { %v679_v45 = vrot.slane %v639_v43, %v1783_v35  ;;  %v886_v6 = vrot.slane %v851_v7, %v1783_v35 }
 0x33c   :  { %v686_v47 = vsel %vm232_vm8, %v679_v45, %v685_v46 }
 0x33d   :  { %1518 = vmatmul.mubr.msk.f32.vlgmr.msra.gmra.mrb[4].mxu0 %vm148_vm1, %v686_v47  ;;  %v854_v34 = vpop.xlane.xlu1 %853  ;;  %v845_v3 = vpop.xlane.xlu0 %844 }
 0x33e   :  { %v878_v49 = vrot.slane %v845_v3, %v1783_v35  ;;  %1526 = vmatpush3.msra.mxu0 %v1812_v61  ;;  %1527 = vmatprep.mubr.msk.f32.mxu0 %vm1660_vm0, %v1659_v0  ;;  %v890_v16 = vrot.slane %v854_v34, %v1783_v35 }
 0x33f   :  { %1535 = vmatprep.subr.mxu0 %v1659_v0 }
 0x340   :  { %v907_v4 = vsel %vm220_vm2, %v882_v48, %v878_v49 }
 0x341   :  { %v908_v50 = vsel %vm222_vm3, %v886_v6, %v907_v4  ;;  %v860_v51 = vpop.xlane.xlu1 %859  ;;  %v857_v15 = vpop.xlane.xlu0 %856 }
 0x342   :  { %v894_v52 = vrot.slane %v857_v15, %v1783_v35  ;;  %v909_v53 = vsel %vm224_vm4, %v890_v16, %v908_v50  ;;  %v898_v21 = vrot.slane %v860_v51, %v1783_v35 }
 0x344   :  { %v910_v55 = vsel %vm226_vm5, %v894_v52, %v909_v53 }
 0x345   :  { %v863_v61 = vpop.xlane.xlu0 %862  ;;  %v1075_v54 = vpop.xlane.xlu1 %1074  ;;  %v911_v57 = vsel %vm228_vm6, %v898_v21, %v910_v55 }
 0x346   :  { %v902_v22 = vrot.slane %v863_v61, %v1783_v35  ;;  %v1109_v9 = vrot.slane %v1075_v54, %v1783_v35 }
 0x348   :  { %v912_v60 = vsel %vm230_vm7, %v902_v22, %v911_v57 }
 0x349   :  { %v866_v41 = vpop.xlane.xlu0 %865  ;;  %v1078_v56 = vpop.xlane.xlu1 %1077 }
 0x34a   :  { %v906_v58 = vrot.slane %v866_v41, %v1783_v35  ;;  %v1113_v11 = vrot.slane %v1078_v56, %v1783_v35 }
 0x34c   :  { %v913_v62 = vsel %vm232_vm8, %v906_v58, %v912_v60 }
 0x34d   :  { %1528 = vmatmul.mubr.msk.f32.vlgmr.msra.gmra.mrb[6].mxu0 %vm148_vm1, %v913_v62  ;;  %v1081_v1 = vpop.xlane.xlu1 %1080  ;;  %v1072_v5 = vpop.xlane.xlu0 %1071 }
 0x34e   :  { %v1105_v10 = vrot.slane %v1072_v5, %v1783_v35  ;;  %1536 = vmatpush3.msra.mxu0 %v1818_v63  ;;  %1537 = vmatprep.mubr.msk.f32.mxu0 %vm1660_vm0, %v1659_v0  ;;  %v1117_v18 = vrot.slane %v1081_v1, %v1783_v35 }
 0x34f   :  { %1545 = vmatprep.subr.mxu0 %v1659_v0 }
 0x350   :  { %v1134_v12 = vsel %vm220_vm2, %v1109_v9, %v1105_v10 }
 0x351   :  { %v1135_v13 = vsel %vm222_vm3, %v1113_v11, %v1134_v12  ;;  %v1087_v14 = vpop.xlane.xlu1 %1086  ;;  %v1084_v17 = vpop.xlane.xlu0 %1083 }
 0x352   :  { %v1121_v19 = vrot.slane %v1084_v17, %v1783_v35  ;;  %v1136_v20 = vsel %vm224_vm4, %v1117_v18, %v1135_v13  ;;  %v1125_v24 = vrot.slane %v1087_v14, %v1783_v35 }
 0x354   :  { %v1137_v25 = vsel %vm226_vm5, %v1121_v19, %v1136_v20 }
 0x355   :  { %v1090_v63 = vpop.xlane.xlu0 %1089  ;;  %v1302_v23 = vpop.xlane.xlu1 %1301  ;;  %v1138_v30 = vsel %vm228_vm6, %v1125_v24, %v1137_v25 }
 0x356   :  { %v1129_v26 = vrot.slane %v1090_v63, %v1783_v35  ;;  %v1336_v37 = vrot.slane %v1302_v23, %v1783_v35 }
 0x358   :  { %v1139_v31 = vsel %vm230_vm7, %v1129_v26, %v1138_v30 }
 0x359   :  { %v1093_v27 = vpop.xlane.xlu0 %1092  ;;  %v1305_v29 = vpop.xlane.xlu1 %1304 }
 0x35a   :  { %v1133_v28 = vrot.slane %v1093_v27, %v1783_v35  ;;  %v1340_v38 = vrot.slane %v1305_v29, %v1783_v35 }
 0x35c   :  { %v1140_v32 = vsel %vm232_vm8, %v1133_v28, %v1139_v31 }
 0x35d   :  { %1538 = vmatmul.mubr.msk.f32.vlgmr.msra.gmra.mrb[8].mxu0 %vm148_vm1, %v1140_v32  ;;  %v1308_v33 = vpop.xlane.xlu1 %1307  ;;  %v1299_v36 = vpop.xlane.xlu0 %1298 }
 0x35e   :  { %v1332_v59 = vrot.slane %v1299_v36, %v1783_v35  ;;  %1546 = vmatpush3.msra.mxu0 %v1824_v2  ;;  %1547 = vmatprep.mubr.msk.f32.mxu0 %vm1660_vm0, %v1659_v0  ;;  %v1344_v39 = vrot.slane %v1308_v33, %v1783_v35 }
 0x360   :  { %v1361_v40 = vsel %vm220_vm2, %v1336_v37, %v1332_v59 }
 0x361   :  { %v1362_v42 = vsel %vm222_vm3, %v1340_v38, %v1361_v40  ;;  %v1314_v43 = vpop.xlane.xlu1 %1313  ;;  %v1311_v7 = vpop.xlane.xlu0 %1310 }
 0x362   :  { %v1363_v44 = vsel %vm224_vm4, %v1344_v39, %v1362_v42  ;;  %v1348_v45 = vrot.slane %v1311_v7, %v1783_v35  ;;  %v1352_v46 = vrot.slane %v1314_v43, %v1783_v35 }
 0x364   :  { %v1364_v2 = vsel %vm226_vm5, %v1348_v45, %v1363_v44 }
 0x365   :  { %v1320_v47 = vpop.xlane.xlu1 %1319  ;;  %v1317_v0 = vpop.xlane.xlu0 %1316  ;;  %v1365_v48 = vsel %vm228_vm6, %v1352_v46, %v1364_v2 }
 0x366   :  { %v1360_v34 = vrot.slane %v1320_v47, %v1783_v35  ;;  %v1356_v3 = vrot.slane %v1317_v0, %v1783_v35 }
 0x368   :  { %v1366_v49 = vsel %vm230_vm7, %v1356_v3, %v1365_v48 }
 0x369   :  { %v1367_v6 = vsel %vm232_vm8, %v1360_v34, %v1366_v49 }
 0x36a   :  { %1548 = vmatmul.mubr.msk.f32.vlgmr.msra.gmra.mrb[10].mxu0 %vm148_vm1, %v1367_v6 }
 0x36d   :  { %v176_v4 = vpop.permute.xlu0 %175 }
 0x36e   :  { %v303_v50 = vadd.f32 %v1827_v8, %v176_v4 }
 0x370   :  { %306 = vst [vmem:[#allocation8] sm:$0xff] %v303_v50 }
 0x400   :  { %v528_v51 = vpop.f32.mrb[2].mxu0 }
 0x401   :  { %v529_v15 = vadd.f32 %v528_v51, %v176_v4  ;;  %v1509_v16 = vpop.f32.mrb[3].mxu0 }
 0x403   :  { %533 = vst [vmem:[#allocation8 + $0x8] sm:$0xff] %v529_v15 }
 0x410   :  { %v755_v52 = vpop.f32.mrb[4].mxu0 }
 0x411   :  { %v756_v53 = vadd.f32 %v755_v52, %v176_v4  ;;  %v1519_v61 = vpop.f32.mrb[5].mxu0 }
 0x413   :  { %760 = vst [vmem:[#allocation8 + $0x10] sm:$0xff] %v756_v53 }
 0x420   :  { %v982_v35 = vpop.f32.mrb[6].mxu0 }
 0x421   :  { %v983_v54 = vadd.f32 %v982_v35, %v176_v4  ;;  %v1529_v21 = vpop.f32.mrb[7].mxu0 }
 0x423   :  { %987 = vst [vmem:[#allocation8 + $0x18] sm:$0xff] %v983_v54 }
 0x430   :  { %v1209_v55 = vpop.f32.mrb[8].mxu0 }
 0x431   :  { %v1210_v22 = vadd.f32 %v1209_v55, %v176_v4  ;;  %v1539_v41 = vpop.f32.mrb[9].mxu0 }
 0x433   :  { %1214 = vst [vmem:[#allocation8 + $0x20] sm:$0xff] %v1210_v22 }
 0x43d   :  { %v1436_v8 = vpop.f32.mrb[10].mxu0 }
 0x43e   :  { %v1437_v56 = vadd.f32 %v1436_v8, %v176_v4  ;;  %v1549_v57 = vpop.f32.mrb[11].mxu0 }
 0x440   :  { %1441 = vst [vmem:[#allocation8 + $0x28] sm:$0xff] %v1437_v56 }
 0x441   :  { %1637 = shalt.err (!%p1634_p0)
}
 0x442   :  { %s1638_s6 = scalar_lea.hbm %s2047_s4, 768 }
 0x443   :  { %p1639_p1 = scmp.ne.s32.totalorder %s2047_s4, %s1638_s6  ;;  %p1642_p2 = scmp.lt.u32.totalorder %s1638_s6, %s2047_s4 }
 0x445   :  { %p1644_p3 = pnand %p1642_p2, %p1639_p1 }
 0x447   :  { %1647 = shalt.err (!%p1644_p3)
}
 0x448   :  { %1453 = dma.vmem_to_hbm [thread:$0]  %s1448_s26, 768, %s2047_s4, [#allocation4], %s1656_s27, %s1656_s27, %s1657_s28  }
 0x449   :  { %1652 = dma.done.wait [#allocation4], 768  }
 0x44a   :  { %1653 = vsyncadd [#allocation4], 4294966528 }
 0x44b   :  { %1457 = vsyncpa [#allocation3], 1 }
 0x44c   :  { %1458 = vsyncpa [#allocation6], 1 }
 0x44d   :  { %1459 = vsyncpa [#allocation4], 1 }

</bundles_post_ra>
